<compile_context>
chip_gen: v6e
topology: v6e:2x2x1
jax: 0.10.0
libtpu: 0.0.40
codegen_flags: <defaults>
</compile_context>

<pallas_src>
import jax
import jax.numpy as jnp
from jax.experimental import pallas as pl
from jax.experimental.pallas import tpu as pltpu

EPS = 1e-5


def _base_module_kernel(x_ref, last_ref, gamma_ref, beta_ref, out_ref):
    # x_ref block: (Tt, D, N)   last/gamma/beta blocks: (D, N)   N = B*P
    x = x_ref[...].astype(jnp.float32)
    last = last_ref[...].astype(jnp.float32)
    gamma = gamma_ref[...].astype(jnp.float32)
    beta = beta_ref[...].astype(jnp.float32)

    # --- norm_on_last_input: relative tensor w.r.t. last input frame ---
    rel = x - last                                     # broadcast over Tt (outer axis)

    # --- used_norm: MotionLayerNorm over the dims axis (sublane reduce) ---
    mean = jnp.mean(rel, axis=1, keepdims=True)        # (Tt, 1, N)
    centered = rel - mean
    var = jnp.mean(centered * centered, axis=1, keepdims=True)
    normed = centered * jax.lax.rsqrt(var + EPS)
    normed = normed * gamma + beta

    # --- dropout: inference-time identity ---
    # TODO(synk): training-mode stochastic dropout via pltpu.prng_* if needed.

    # --- forward(): abstract in BaseTorchModule -> identity placeholder ---
    # TODO(synk): subclass-specific forward has no definition in this module.
    preds = normed

    # --- out_features post_process: none required for the synthetic config ---

    # --- de-normalization: add seq_last back (out_points == in_points) ---
    preds = preds + last

    out_ref[...] = preds.astype(out_ref.dtype)


def base_torch_module_forward(x, gamma, beta, *, t_tile=None):
    """x: (B, T, P, D) or unbatched (T, P, D)  ->  predictions, same shape."""
    unbatched = x.ndim == 3
    if unbatched:
        x = x[None]                                    # allow_unbatched
    B, T, P, D = x.shape
    N = B * P

    # Layout plumbing (wrapper-side): D -> sublanes, flattened (B, P) -> lanes,
    # T -> leading grid-tiled axis.
    xt = jnp.transpose(x, (1, 3, 0, 2)).reshape(T, D, N)        # (T, D, B*P)
    seq_last = xt[T - 1]                                        # (D, B*P)
    gamma_b = jnp.broadcast_to(gamma.T[:, None, :], (D, B, P)).reshape(D, N)
    beta_b = jnp.broadcast_to(beta.T[:, None, :], (D, B, P)).reshape(D, N)

    # Pick the largest T-tile that keeps double-buffered in+out blocks well under
    # the scoped-VMEM limit (~4 MiB per block -> ~16 MiB pipelined).
    if t_tile is None:
        per_t_bytes = D * N * 4
        budget_bytes = 4 * 1024 * 1024
        t_tile = max(1, min(T, budget_bytes // max(per_t_bytes, 1)))
    while T % t_tile != 0:                              # keep the grid exact
        t_tile -= 1
    grid = (pl.cdiv(T, t_tile),)

    out_t = pl.pallas_call(
        _base_module_kernel,
        out_shape=jax.ShapeDtypeStruct((T, D, N), x.dtype),
        grid=grid,
        in_specs=[
            pl.BlockSpec((t_tile, D, N), lambda t: (t, 0, 0)),
            pl.BlockSpec((D, N), lambda t: (0, 0)),
            pl.BlockSpec((D, N), lambda t: (0, 0)),
            pl.BlockSpec((D, N), lambda t: (0, 0)),
        ],
        out_specs=pl.BlockSpec((t_tile, D, N), lambda t: (t, 0, 0)),
        compiler_params=pltpu.CompilerParams(
            dimension_semantics=("parallel",),
            vmem_limit_bytes=32 * 1024 * 1024,
        ),
    )(xt, seq_last, gamma_b, beta_b)

    # Back to the module's natural (B, T, P, D) layout.
    out = jnp.transpose(out_t.reshape(T, D, B, P), (2, 0, 3, 1))
    if unbatched:
        out = out[0]
    return out


def _reference(x, gamma, beta):
    """Pure-JAX reference for correctness checking."""
    seq_last = x[:, -1:, :, :]
    rel = x - seq_last
    mean = jnp.mean(rel, axis=-1, keepdims=True)
    var = jnp.mean((rel - mean) ** 2, axis=-1, keepdims=True)
    normed = (rel - mean) * jax.lax.rsqrt(var + EPS) * gamma + beta
    return normed + seq_last


if __name__ == "__main__":
    # Small shapes consistent with the module:
    # batch=2, in_sequence_size=8, num_in_points=4, num_in_dims=8
    B, T, P, D = 2, 8, 4, 8
    key = jax.random.PRNGKey(0)
    kx, kg, kb = jax.random.split(key, 3)

    x = jax.random.normal(kx, (B, T, P, D), dtype=jnp.float32)
    # Deterministic "MotionLayerNorm" parameters (synthetic, not a checkpoint).
    gamma = 1.0 + 0.01 * jax.random.normal(kg, (P, D), dtype=jnp.float32)
    beta = 0.01 * jax.random.normal(kb, (P, D), dtype=jnp.float32)

    out = jax.block_until_ready(base_torch_module_forward(x, gamma, beta))
    ref = _reference(x, gamma, beta)
    assert out.shape == (B, T, P, D)
    assert jnp.allclose(out, ref, atol=1e-4, rtol=1e-4)

    # also exercise the unbatched path (allow_unbatched decorator)
    out_ub = jax.block_until_ready(base_torch_module_forward(x[0], gamma, beta))
    assert out_ub.shape == (T, P, D)
    assert jnp.allclose(out_ub, ref[0], atol=1e-4, rtol=1e-4)

    print("KERNEL_OK")
</pallas_src>

<mosaic_0001>
module attributes {stable_mosaic.version = 11 : i64} {
  func.func @_base_module_kernel(%arg0: i32, %arg1: memref<8x8x8xf32, #tpu.memory_space<vmem>>, %arg2: memref<8x8xf32, #tpu.memory_space<vmem>>, %arg3: memref<8x8xf32, #tpu.memory_space<vmem>>, %arg4: memref<8x8xf32, #tpu.memory_space<vmem>>, %arg5: memref<8x8x8xf32, #tpu.memory_space<vmem>>) attributes {dimension_semantics = [#tpu.dimension_semantics<parallel>], iteration_bounds = array<i64: 1>, scalar_prefetch = 0 : i64, scratch_operands = 0 : i64, tpu.core_type = #tpu.core_type<tc>, window_params = [{transform_indices = @transform_0, window_bounds = array<i64: 8, 8, 8>}, {pipeline_mode = #tpu.pipeline_mode<synchronous>, transform_indices = @transform_1, window_bounds = array<i64: 8, 8>}, {pipeline_mode = #tpu.pipeline_mode<synchronous>, transform_indices = @transform_2, window_bounds = array<i64: 8, 8>}, {pipeline_mode = #tpu.pipeline_mode<synchronous>, transform_indices = @transform_3, window_bounds = array<i64: 8, 8>}, {transform_indices = @transform_4, window_bounds = array<i64: 8, 8, 8>}]} {
    %c0 = arith.constant 0 : index
    %c0_0 = arith.constant 0 : index
    %c0_1 = arith.constant 0 : index
    %0 = vector.load %arg1[%c0, %c0_0, %c0_1] : memref<8x8x8xf32, #tpu.memory_space<vmem>>, vector<8x8x8xf32>
    %c0_2 = arith.constant 0 : index
    %c0_3 = arith.constant 0 : index
    %1 = vector.load %arg2[%c0_2, %c0_3] : memref<8x8xf32, #tpu.memory_space<vmem>>, vector<8x8xf32>
    %c0_4 = arith.constant 0 : index
    %c0_5 = arith.constant 0 : index
    %2 = vector.load %arg3[%c0_4, %c0_5] : memref<8x8xf32, #tpu.memory_space<vmem>>, vector<8x8xf32>
    %c0_6 = arith.constant 0 : index
    %c0_7 = arith.constant 0 : index
    %3 = vector.load %arg4[%c0_6, %c0_7] : memref<8x8xf32, #tpu.memory_space<vmem>>, vector<8x8xf32>
    %4 = vector.shape_cast %1 : vector<8x8xf32> to vector<1x8x8xf32>
    %5 = vector.broadcast %4 : vector<1x8x8xf32> to vector<8x8x8xf32>
    %6 = arith.subf %0, %5 : vector<8x8x8xf32>
    %cst = arith.constant dense<0.000000e+00> : vector<8x8xf32>
    %7 = vector.multi_reduction <add>, %6, %cst [1] : vector<8x8x8xf32> to vector<8x8xf32>
    %8 = vector.shape_cast %7 : vector<8x8xf32> to vector<8x1x8xf32>
    %cst_8 = arith.constant 8.000000e+00 : f32
    %9 = vector.broadcast %cst_8 : f32 to vector<8x1x8xf32>
    %10 = arith.divf %8, %9 : vector<8x1x8xf32>
    %11 = vector.broadcast %10 : vector<8x1x8xf32> to vector<8x8x8xf32>
    %12 = arith.subf %6, %11 : vector<8x8x8xf32>
    %13 = arith.mulf %12, %12 : vector<8x8x8xf32>
    %cst_9 = arith.constant dense<0.000000e+00> : vector<8x8xf32>
    %14 = vector.multi_reduction <add>, %13, %cst_9 [1] : vector<8x8x8xf32> to vector<8x8xf32>
    %15 = vector.shape_cast %14 : vector<8x8xf32> to vector<8x1x8xf32>
    %cst_10 = arith.constant 8.000000e+00 : f32
    %16 = vector.broadcast %cst_10 : f32 to vector<8x1x8xf32>
    %17 = arith.divf %15, %16 : vector<8x1x8xf32>
    %cst_11 = arith.constant 9.99999974E-6 : f32
    %18 = vector.broadcast %cst_11 : f32 to vector<8x1x8xf32>
    %19 = arith.addf %17, %18 : vector<8x1x8xf32>
    %20 = math.rsqrt %19 : vector<8x1x8xf32>
    %21 = vector.broadcast %20 : vector<8x1x8xf32> to vector<8x8x8xf32>
    %22 = arith.mulf %12, %21 : vector<8x8x8xf32>
    %23 = vector.shape_cast %2 : vector<8x8xf32> to vector<1x8x8xf32>
    %24 = vector.broadcast %23 : vector<1x8x8xf32> to vector<8x8x8xf32>
    %25 = arith.mulf %22, %24 : vector<8x8x8xf32>
    %26 = vector.shape_cast %3 : vector<8x8xf32> to vector<1x8x8xf32>
    %27 = vector.broadcast %26 : vector<1x8x8xf32> to vector<8x8x8xf32>
    %28 = arith.addf %25, %27 : vector<8x8x8xf32>
    %29 = vector.shape_cast %1 : vector<8x8xf32> to vector<1x8x8xf32>
    %30 = vector.broadcast %29 : vector<1x8x8xf32> to vector<8x8x8xf32>
    %31 = arith.addf %28, %30 : vector<8x8x8xf32>
    %c0_12 = arith.constant 0 : index
    %c0_13 = arith.constant 0 : index
    %c0_14 = arith.constant 0 : index
    %32 = vector.load %arg5[%c0_12, %c0_13, %c0_14] : memref<8x8x8xf32, #tpu.memory_space<vmem>>, vector<8x8x8xf32>
    tpu.vector_store %arg5[%c0_12, %c0_13, %c0_14], %31 {strides = array<i32>} : memref<8x8x8xf32, #tpu.memory_space<vmem>>, vector<8x8x8xf32>,
    return
  }
  func.func @transform_0(%arg0: i32) -> (i32, i32, i32) {
    %c0_i32 = arith.constant 0 : i32
    %c0_i32_0 = arith.constant 0 : i32
    %c0_i32_1 = arith.constant 0 : i32
    return %arg0, %c0_i32, %c0_i32_0 : i32, i32, i32
  }
  func.func @transform_1(%arg0: i32) -> (i32, i32) {
    %c0_i32 = arith.constant 0 : i32
    %c0_i32_0 = arith.constant 0 : i32
    %c0_i32_1 = arith.constant 0 : i32
    return %c0_i32, %c0_i32_0 : i32, i32
  }
  func.func @transform_2(%arg0: i32) -> (i32, i32) {
    %c0_i32 = arith.constant 0 : i32
    %c0_i32_0 = arith.constant 0 : i32
    %c0_i32_1 = arith.constant 0 : i32
    return %c0_i32, %c0_i32_0 : i32, i32
  }
  func.func @transform_3(%arg0: i32) -> (i32, i32) {
    %c0_i32 = arith.constant 0 : i32
    %c0_i32_0 = arith.constant 0 : i32
    %c0_i32_1 = arith.constant 0 : i32
    return %c0_i32, %c0_i32_0 : i32, i32
  }
  func.func @transform_4(%arg0: i32) -> (i32, i32, i32) {
    %c0_i32 = arith.constant 0 : i32
    %c0_i32_0 = arith.constant 0 : i32
    %c0_i32_1 = arith.constant 0 : i32
    return %arg0, %c0_i32, %c0_i32_0 : i32, i32, i32
  }
}

</mosaic_0001>

<bundles_post_ra>
// kernel: tpu_custom_call.1
= control target key start
LH: loop header
LB: loop body
LE: loop exit
PB: predicated region body
PF: predicated region fallthrough
CT: control target
= control target key end

     0   :  { %9 = vsyncpa [#allocation3], 0  ;;  %s605_s0 = inlined_call_operand.hbm [shape: f32[8,8,8], index: 0, kind: input, shape index: {}]   ;;  %s606_s1 = inlined_call_operand.hbm [shape: f32[8,8], index: 1, kind: input, shape index: {}]   ;;  %s607_s2 = inlined_call_operand.hbm [shape: f32[8,8], index: 2, kind: input, shape index: {}]   ;;  %s608_s3 = inlined_call_operand.hbm [shape: f32[8,8], index: 3, kind: input, shape index: {}]   ;;  %s609_s4 = inlined_call_operand.hbm [shape: f32[8,8,8], index: 4, kind: output, shape index: {}]  }
   0x1   :  { %10 = vsyncpa [#allocation6], 0 }
   0x2   :  { %11 = vsyncpa [#allocation9], 0 }
   0x3   :  { %12 = vsyncpa [#allocation4], 0  ;;  %s438_s15 = smov [#allocation5]   ;;  %s439_s17 = smov [#allocation2]  }
   0x4   :  { %s31_s16 = sshll.u32 %s438_s15, 4  ;;  %s18_s18 = sshll.u32 %s439_s17, 4  ;;  %s32_s16 = int_to_ptr.vmem [resolvable:$true] %s31_s16  ;;  %s19_s18 = int_to_ptr.vmem [resolvable:$true] %s18_s18 }
   0x5   :  { %s338_s19 = scalar_lea.vmem %s32_s16, 128  ;;  %p343_p1 = scmp.lt.s32.totalorder %s32_s16, %s32_s16 }
   0x6   :  { %p339_p0 = scmp.ne.s32.totalorder %s32_s16, %s338_s19  ;;  %p344_p2 = scmp.lt.s32.totalorder %s338_s19, %s338_s19 }
   0x8   :  { %p345_p3 = por %p344_p2, %p343_p1 }
   0xa   :  { %p346_p4 = pnand %p345_p3, %p339_p0 }
   0xc   :  { %349 = shalt.err (!%p346_p4)
}
   0xd   :  { %34 = dma.hbm_to_vmem [thread:$0]  %s606_s1, 128, %s32_s16, [#allocation6]  }
   0xe   :  { %s358_s22 = scalar_lea.vmem %s19_s18, 1024  ;;  %p363_p6 = scmp.lt.s32.totalorder %s19_s18, %s19_s18 }
   0xf   :  { %p359_p5 = scmp.ne.s32.totalorder %s19_s18, %s358_s22  ;;  %p364_p7 = scmp.lt.s32.totalorder %s358_s22, %s358_s22 }
  0x11   :  { %p365_p8 = por %p364_p7, %p363_p6 }
  0x13   :  { %p366_p9 = pnand %p365_p8, %p359_p5 }
  0x15   :  { %369 = shalt.err (!%p366_p9)
}
  0x16   :  { %s440_s23 = smov 128   ;;  %s441_s24 = smov 8  }
  0x17   :  { %24 = dma.hbm_to_vmem [thread:$0]  %s605_s0, 1024, %s19_s18, [#allocation3], %s440_s23, %s440_s23, %s441_s24  }
  0x18   :  { %s442_s27 = smov [#allocation7]   ;;  %s443_s29 = smov [#allocation8]  }
  0x19   :  { %s41_s28 = sshll.u32 %s442_s27, 4  ;;  %s51_s1 = sshll.u32 %s443_s29, 4  ;;  %s42_s28 = int_to_ptr.vmem [resolvable:$true] %s41_s28  ;;  %s52_s1 = int_to_ptr.vmem [resolvable:$true] %s51_s1 }
  0x1a   :  { %s378_s30 = scalar_lea.vmem %s42_s28, 128  ;;  %p383_p11 = scmp.lt.s32.totalorder %s42_s28, %s42_s28 }
  0x1b   :  { %p379_p10 = scmp.ne.s32.totalorder %s42_s28, %s378_s30  ;;  %p384_p12 = scmp.lt.s32.totalorder %s378_s30, %s378_s30 }
  0x1d   :  { %p385_p13 = por %p384_p12, %p383_p11 }
  0x1f   :  { %p386_p0 = pnand %p385_p13, %p379_p10 }
  0x21   :  { %389 = shalt.err (!%p386_p0)
}
  0x22   :  { %44 = dma.hbm_to_vmem [thread:$0]  %s607_s2, 128, %s42_s28, [#allocation6]  }
  0x23   :  { %s398_s7 = scalar_lea.vmem %s52_s1, 128  ;;  %p403_p2 = scmp.lt.s32.totalorder %s52_s1, %s52_s1 }
  0x24   :  { %p399_p1 = scmp.ne.s32.totalorder %s52_s1, %s398_s7  ;;  %p404_p3 = scmp.lt.s32.totalorder %s398_s7, %s398_s7 }
  0x26   :  { %p405_p4 = por %p404_p3, %p403_p2 }
  0x28   :  { %p406_p5 = pnand %p405_p4, %p399_p1 }
  0x2a   :  { %409 = shalt.err (!%p406_p5)
}
  0x2b   :  { %54 = dma.hbm_to_vmem [thread:$0]  %s608_s3, 128, %s52_s1, [#allocation9]  }
  0x2c   :  { %430 = dma.done.wait [#allocation3], 1024  }
  0x2d   :  { %431 = vsyncadd [#allocation3], 4294966272 }
  0x2e   :  { %432 = dma.done.wait [#allocation6], 256  }
  0x2f   :  { %433 = vsyncadd [#allocation6], 4294967040 }
  0x30   :  { %434 = dma.done.wait [#allocation9], 128  }
  0x31   :  { %435 = vsyncadd [#allocation9], 4294967168  ;;  %v67_v0 = vld [vmem:[#allocation2] sm:$0xff]  ;;  %vm86_vm0 = vcmask 64512   ;;  %v68_v3 = vld [vmem:[#allocation2 + $0x8] sm:$0xff]  ;;  %s444_s2 = smov [#allocation10]  }
  0x32   :  { %v485_v1 = vld [vmem:[#allocation5] sm:$0xff]  ;;  %v69_v4 = vld [vmem:[#allocation2 + $0x10] sm:$0xff]  ;;  %v70_v7 = vld [vmem:[#allocation2 + $0x18] sm:$0xff]  ;;  %s293_s3 = sshll.u32 %s444_s2, 4  ;;  %s294_s3 = int_to_ptr.vmem [resolvable:$true] %s293_s3 }
  0x33   :  { %v488_v2 = vsub.f32 %v67_v0, %v485_v1  ;;  %v491_v5 = vsub.f32 %v68_v3, %v485_v1  ;;  %v494_v6 = vsub.f32 %v69_v4, %v485_v1  ;;  %v71_v8 = vld [vmem:[#allocation2 + $0x20] sm:$0xff]  ;;  %v72_v9 = vld [vmem:[#allocation2 + $0x28] sm:$0xff]  ;;  %v499_v11 = vsub.f32 %v70_v7, %v485_v1  ;;  %v73_v14 = vld [vmem:[#allocation2 + $0x30] sm:$0xff]  ;;  %s410_s9 = scalar_lea.vmem %s294_s3, 1024  ;;  %p415_p7 = scmp.lt.s32.totalorder %s294_s3, %s294_s3 }
  0x34   :  { %v502_v12 = vsub.f32 %v71_v8, %v485_v1  ;;  %v505_v13 = vsub.f32 %v72_v9, %v485_v1  ;;  %v512_v18 = vsub.f32 %v73_v14, %v485_v1  ;;  %v74_v27 = vld [vmem:[#allocation2 + $0x38] sm:$0xff]  ;;  %p411_p6 = scmp.ne.s32.totalorder %s294_s3, %s410_s9  ;;  %p416_p8 = scmp.lt.s32.totalorder %s410_s9, %s410_s9 }
  0x35   :  { %v87_v10 = vsel %vm86_vm0, %v488_v2, 0.0  ;;  %v94_v16 = vsel %vm86_vm0, %v491_v5, 0.0  ;;  %v101_v17 = vsel %vm86_vm0, %v494_v6, 0.0  ;;  %v108_v21 = vsel %vm86_vm0, %v499_v11, 0.0 }
  0x36   :  { %v88_v15 = vrot.slane %v87_v10, 4  ;;  %v95_v19 = vrot.slane %v94_v16, 4  ;;  %v102_v20 = vrot.slane %v101_v17, 4  ;;  %v115_v22 = vsel %vm86_vm0, %v502_v12, 0.0  ;;  %p417_p9 = por %p416_p8, %p415_p7 }
  0x37   :  { %v109_v24 = vrot.slane %v108_v21, 4  ;;  %v116_v25 = vrot.slane %v115_v22, 4  ;;  %v122_v26 = vsel %vm86_vm0, %v505_v13, 0.0  ;;  %v129_v31 = vsel %vm86_vm0, %v512_v18, 0.0 }
  0x38   :  { %v89_v23 = vadd.f32 %v88_v15, %v87_v10  ;;  %v96_v28 = vadd.f32 %v95_v19, %v94_v16  ;;  %v103_v29 = vadd.f32 %v102_v20, %v101_v17  ;;  %v123_v30 = vrot.slane %v122_v26, 4  ;;  %p418_p10 = pnand %p417_p9, %p411_p6 }
  0x39   :  { %v110_v33 = vadd.f32 %v109_v24, %v108_v21  ;;  %v117_v34 = vadd.f32 %v116_v25, %v115_v22  ;;  %v130_v35 = vrot.slane %v129_v31, 4  ;;  %v523_v39 = vsub.f32 %v74_v27, %v485_v1 }
  0x3a   :  { %v90_v32 = vrot.slane %v89_v23, 2  ;;  %v97_v36 = vrot.slane %v96_v28, 2  ;;  %v104_v37 = vrot.slane %v103_v29, 2  ;;  %v124_v38 = vadd.f32 %v123_v30, %v122_v26 }
  0x3b   :  { %v111_v41 = vrot.slane %v110_v33, 2  ;;  %v118_v42 = vrot.slane %v117_v34, 2  ;;  %v131_v43 = vadd.f32 %v130_v35, %v129_v31  ;;  %v136_v47 = vsel %vm86_vm0, %v523_v39, 0.0 }
  0x3c   :  { %v91_v40 = vadd.f32 %v90_v32, %v89_v23  ;;  %v98_v44 = vadd.f32 %v97_v36, %v96_v28  ;;  %v105_v45 = vadd.f32 %v104_v37, %v103_v29  ;;  %v125_v46 = vrot.slane %v124_v38, 2 }
  0x3d   :  { %v112_v49 = vadd.f32 %v111_v41, %v110_v33  ;;  %v119_v50 = vadd.f32 %v118_v42, %v117_v34  ;;  %v132_v51 = vrot.slane %v131_v43, 2  ;;  %v137_v55 = vrot.slane %v136_v47, 4 }
  0x3e   :  { %v92_v48 = vrot.slane %v91_v40, 1  ;;  %v99_v52 = vrot.slane %v98_v44, 1  ;;  %v106_v53 = vrot.slane %v105_v45, 1  ;;  %v126_v54 = vadd.f32 %v125_v46, %v124_v38 }
  0x3f   :  { %v113_v57 = vrot.slane %v112_v49, 1  ;;  %v120_v58 = vrot.slane %v119_v50, 1  ;;  %v133_v59 = vadd.f32 %v132_v51, %v131_v43  ;;  %v138_v63 = vadd.f32 %v137_v55, %v136_v47 }
  0x40   :  { %v93_v56 = vadd.f32 %v92_v48, %v91_v40  ;;  %v100_v60 = vadd.f32 %v99_v52, %v98_v44  ;;  %v107_v61 = vadd.f32 %v106_v53, %v105_v45  ;;  %v127_v62 = vrot.slane %v126_v54, 1 }
  0x41   :  { %v114_v3 = vadd.f32 %v113_v57, %v112_v49  ;;  %v121_v4 = vadd.f32 %v120_v58, %v119_v50  ;;  %v134_v7 = vrot.slane %v133_v59, 1  ;;  %v139_v14 = vrot.slane %v138_v63, 2 }
  0x42   :  { %v144_v0 = vmul.f32 0.125, %v93_v56  ;;  %v145_v8 = vmul.f32 0.125, %v100_v60  ;;  %v146_v9 = vmul.f32 0.125, %v107_v61  ;;  %v128_v10 = vadd.f32 %v127_v62, %v126_v54 }
  0x43   :  { %v147_v16 = vmul.f32 0.125, %v114_v3  ;;  %v148_v17 = vmul.f32 0.125, %v121_v4  ;;  %v135_v19 = vadd.f32 %v134_v7, %v133_v59  ;;  %v140_v23 = vadd.f32 %v139_v14, %v138_v63 }
  0x44   :  { %v528_v15 = vsub.f32 %v488_v2, %v144_v0  ;;  %v531_v20 = vsub.f32 %v491_v5, %v145_v8  ;;  %v534_v21 = vsub.f32 %v494_v6, %v146_v9  ;;  %v149_v22 = vmul.f32 0.125, %v128_v10 }
  0x45   :  { %v539_v25 = vsub.f32 %v499_v11, %v147_v16  ;;  %v542_v2 = vsub.f32 %v502_v12, %v148_v17  ;;  %v150_v26 = vmul.f32 0.125, %v135_v19  ;;  %v141_v28 = vrot.slane %v140_v23, 1 }
  0x46   :  { %v160_v24 = vmul.f32 %v528_v15, %v528_v15  ;;  %v161_v27 = vmul.f32 %v531_v20, %v531_v20  ;;  %v162_v5 = vmul.f32 %v534_v21, %v534_v21  ;;  %v549_v6 = vsub.f32 %v505_v13, %v149_v22 }
  0x47   :  { %v163_v11 = vmul.f32 %v539_v25, %v539_v25  ;;  %v164_v12 = vmul.f32 %v542_v2, %v542_v2  ;;  %v557_v30 = vsub.f32 %v512_v18, %v150_v26  ;;  %v142_v49 = vadd.f32 %v141_v28, %v140_v23 }
  0x48   :  { %v168_v29 = vsel %vm86_vm0, %v160_v24, 0.0  ;;  %v175_v32 = vsel %vm86_vm0, %v161_v27, 0.0  ;;  %v182_v33 = vsel %vm86_vm0, %v162_v5, 0.0  ;;  %v165_v13 = vmul.f32 %v549_v6, %v549_v6 }
  0x49   :  { %v169_v31 = vrot.slane %v168_v29, 4  ;;  %v176_v34 = vrot.slane %v175_v32, 4  ;;  %v183_v35 = vrot.slane %v182_v33, 4  ;;  %v189_v36 = vsel %vm86_vm0, %v163_v11, 0.0 }
  0x4a   :  { %v196_v37 = vsel %vm86_vm0, %v164_v12, 0.0  ;;  %v190_v40 = vrot.slane %v189_v36, 4  ;;  %v203_v18 = vsel %vm86_vm0, %v165_v13, 0.0  ;;  %v166_v45 = vmul.f32 %v557_v30, %v557_v30 }
  0x4b   :  { %v170_v38 = vadd.f32 %v169_v31, %v168_v29  ;;  %v197_v41 = vrot.slane %v196_v37, 4  ;;  %v177_v42 = vadd.f32 %v176_v34, %v175_v32  ;;  %v184_v43 = vadd.f32 %v183_v35, %v182_v33 }
  0x4c   :  { %v204_v44 = vrot.slane %v203_v18, 4  ;;  %v191_v47 = vadd.f32 %v190_v40, %v189_v36  ;;  %v210_v53 = vsel %vm86_vm0, %v166_v45, 0.0  ;;  %v151_v61 = vmul.f32 0.125, %v142_v49 }
  0x4d   :  { %v171_v46 = vrot.slane %v170_v38, 2  ;;  %v198_v48 = vadd.f32 %v197_v41, %v196_v37  ;;  %v178_v50 = vrot.slane %v177_v42, 2  ;;  %v185_v51 = vrot.slane %v184_v43, 2 }
  0x4e   :  { %v205_v52 = vadd.f32 %v204_v44, %v203_v18  ;;  %v192_v55 = vrot.slane %v191_v47, 2  ;;  %v211_v57 = vrot.slane %v210_v53, 4  ;;  %v570_v9 = vsub.f32 %v523_v39, %v151_v61 }
  0x4f   :  { %v172_v54 = vadd.f32 %v171_v46, %v170_v38  ;;  %v199_v56 = vrot.slane %v198_v48, 2  ;;  %v179_v58 = vadd.f32 %v178_v50, %v177_v42  ;;  %v186_v59 = vadd.f32 %v185_v51, %v184_v43  ;;  %v76_v51 = vld [vmem:[#allocation7] sm:$0xff] }
  0x50   :  { %v206_v60 = vrot.slane %v205_v52, 2  ;;  %v193_v63 = vadd.f32 %v192_v55, %v191_v47  ;;  %v212_v3 = vadd.f32 %v211_v57, %v210_v53  ;;  %v167_v24 = vmul.f32 %v570_v9, %v570_v9 }
  0x51   :  { %v173_v62 = vrot.slane %v172_v54, 1  ;;  %v200_v0 = vadd.f32 %v199_v56, %v198_v48  ;;  %v180_v4 = vrot.slane %v179_v58, 1  ;;  %v187_v7 = vrot.slane %v186_v59, 1  ;;  %v77_v56 = vld [vmem:[#allocation8] sm:$0xff] }
  0x52   :  { %v207_v8 = vadd.f32 %v206_v60, %v205_v52  ;;  %v194_v14 = vrot.slane %v193_v63, 1  ;;  %v213_v17 = vrot.slane %v212_v3, 2  ;;  %v217_v39 = vsel %vm86_vm0, %v167_v24, 0.0 }
  0x53   :  { %v174_v10 = vadd.f32 %v173_v62, %v172_v54  ;;  %v201_v16 = vrot.slane %v200_v0, 1  ;;  %v181_v19 = vadd.f32 %v180_v4, %v179_v58  ;;  %v188_v22 = vadd.f32 %v187_v7, %v186_v59 }
  0x54   :  { %v208_v23 = vrot.slane %v207_v8, 1  ;;  %v195_v27 = vadd.f32 %v194_v14, %v193_v63  ;;  %v214_v28 = vadd.f32 %v213_v17, %v212_v3  ;;  %v218_v37 = vrot.slane %v217_v39, 4 }
  0x55   :  { %v224_v26 = vmul.f32 0.125, %v174_v10  ;;  %v202_v5 = vadd.f32 %v201_v16, %v200_v0  ;;  %v225_v29 = vmul.f32 0.125, %v181_v19  ;;  %v226_v11 = vmul.f32 0.125, %v188_v22 }
  0x56   :  { %v209_v12 = vadd.f32 %v208_v23, %v207_v8  ;;  %v227_v32 = vmul.f32 0.125, %v195_v27  ;;  %v215_v13 = vrot.slane %v214_v28, 1  ;;  %v219_v42 = vadd.f32 %v218_v37, %v217_v39 }
  0x57   :  { %v232_v31 = vadd.f32 1e-05, %v224_v26  ;;  %v228_v33 = vmul.f32 0.125, %v202_v5  ;;  %v233_v34 = vadd.f32 1e-05, %v225_v29 }
  0x58   :  { %v234_v35 = vadd.f32 1e-05, %v226_v11  ;;  %v229_v36 = vmul.f32 0.125, %v209_v12  ;;  %v235_v38 = vadd.f32 1e-05, %v227_v32  ;;  %v216_v41 = vadd.f32 %v215_v13, %v214_v28 }
  0x59   :  { %314 = vrsqrt.f32 %v232_v31  ;;  %v236_v40 = vadd.f32 1e-05, %v228_v33  ;;  %v220_v44 = vrot.slane %v219_v42, 2 }
  0x5a   :  { %316 = vrsqrt.f32 %v233_v34  ;;  %v237_v18 = vadd.f32 1e-05, %v229_v36  ;;  %v230_v43 = vmul.f32 0.125, %v216_v41 }
  0x5b   :  { %318 = vrsqrt.f32 %v234_v35  ;;  %v221_v46 = vadd.f32 %v220_v44, %v219_v42 }
  0x5c   :  { %320 = vrsqrt.f32 %v235_v38  ;;  %v238_v45 = vadd.f32 1e-05, %v230_v43 }
  0x5d   :  { %322 = vrsqrt.f32 %v236_v40  ;;  %v222_v47 = vrot.slane %v221_v46, 1 }
  0x5e   :  { %324 = vrsqrt.f32 %v237_v18 }
  0x5f   :  { %326 = vrsqrt.f32 %v238_v45  ;;  %v223_v48 = vadd.f32 %v222_v47, %v221_v46 }
  0x61   :  { %v231_v49 = vmul.f32 0.125, %v223_v48 }
  0x63   :  { %v239_v52 = vadd.f32 1e-05, %v231_v49 }
  0x65   :  { %328 = vrsqrt.f32 %v239_v52 }
  0x66   :  { %v315_v50 = vpop.eup %314 }
  0x67   :  { %v317_v53 = vpop.eup %316  ;;  %v248_v54 = vmul.f32 %v315_v50, %v528_v15 }
  0x68   :  { %v319_v55 = vpop.eup %318  ;;  %v249_v57 = vmul.f32 %v317_v53, %v531_v20 }
  0x69   :  { %v321_v58 = vpop.eup %320  ;;  %v256_v59 = vmul.f32 %v248_v54, %v76_v51  ;;  %v250_v60 = vmul.f32 %v319_v55, %v534_v21 }
  0x6a   :  { %v323_v61 = vpop.eup %322  ;;  %v257_v62 = vmul.f32 %v249_v57, %v76_v51  ;;  %v251_v63 = vmul.f32 %v321_v58, %v539_v25 }
  0x6b   :  { %v325_v0 = vpop.eup %324  ;;  %v264_v3 = vadd.f32 %v256_v59, %v77_v56  ;;  %v258_v4 = vmul.f32 %v250_v60, %v76_v51  ;;  %v252_v7 = vmul.f32 %v323_v61, %v542_v2 }
  0x6c   :  { %v327_v8 = vpop.eup %326  ;;  %v265_v15 = vadd.f32 %v257_v62, %v77_v56  ;;  %v259_v10 = vmul.f32 %v251_v63, %v76_v51  ;;  %v253_v14 = vmul.f32 %v325_v0, %v549_v6 }
  0x6d   :  { %v272_v20 = vadd.f32 %v264_v3, %v485_v1  ;;  %v266_v16 = vadd.f32 %v258_v4, %v77_v56  ;;  %v260_v17 = vmul.f32 %v252_v7, %v76_v51  ;;  %v254_v21 = vmul.f32 %v327_v8, %v557_v30 }
  0x6e   :  { %v273_v19 = vadd.f32 %v265_v15, %v485_v1  ;;  %v267_v22 = vadd.f32 %v259_v10, %v77_v56  ;;  %v261_v25 = vmul.f32 %v253_v14, %v76_v51 }
  0x6f   :  { %280 = vst.msk [vmem:[#allocation10] sm:$0xff] %vm86_vm0, %v272_v20  ;;  %v274_v23 = vadd.f32 %v266_v16, %v485_v1  ;;  %v268_v2 = vadd.f32 %v260_v17, %v77_v56  ;;  %v262_v24 = vmul.f32 %v254_v21, %v76_v51 }
  0x70   :  { %281 = vst.msk [vmem:[#allocation10 + $0x8] sm:$0xff] %vm86_vm0, %v273_v19  ;;  %v275_v6 = vadd.f32 %v267_v22, %v485_v1  ;;  %v269_v26 = vadd.f32 %v261_v25, %v77_v56 }
  0x71   :  { %282 = vst.msk [vmem:[#allocation10 + $0x10] sm:$0xff] %vm86_vm0, %v274_v23  ;;  %v276_v27 = vadd.f32 %v268_v2, %v485_v1  ;;  %v270_v30 = vadd.f32 %v262_v24, %v77_v56 }
  0x72   :  { %283 = vst.msk [vmem:[#allocation10 + $0x18] sm:$0xff] %vm86_vm0, %v275_v6  ;;  %v277_v5 = vadd.f32 %v269_v26, %v485_v1  ;;  %v329_v29 = vpop.eup %328 }
  0x73   :  { %284 = vst.msk [vmem:[#allocation10 + $0x20] sm:$0xff] %vm86_vm0, %v276_v27  ;;  %v278_v28 = vadd.f32 %v270_v30, %v485_v1  ;;  %v255_v11 = vmul.f32 %v329_v29, %v570_v9 }
  0x74   :  { %285 = vst.msk [vmem:[#allocation10 + $0x28] sm:$0xff] %vm86_vm0, %v277_v5 }
  0x75   :  { %286 = vst.msk [vmem:[#allocation10 + $0x30] sm:$0xff] %vm86_vm0, %v278_v28  ;;  %v263_v12 = vmul.f32 %v255_v11, %v76_v51 }
  0x77   :  { %v271_v39 = vadd.f32 %v263_v12, %v77_v56 }
  0x79   :  { %v279_v31 = vadd.f32 %v271_v39, %v485_v1 }
  0x7b   :  { %287 = vst.msk [vmem:[#allocation10 + $0x38] sm:$0xff] %vm86_vm0, %v279_v31 }
  0x7c   :  { %421 = shalt.err (!%p418_p10)
}
  0x7d   :  { %299 = dma.vmem_to_hbm [thread:$0]  %s294_s3, 1024, %s609_s4, [#allocation4], %s440_s23, %s440_s23, %s441_s24  }
  0x7e   :  { %436 = dma.done.wait [#allocation4], 1024  }
  0x7f   :  { %437 = vsyncadd [#allocation4], 4294966272 }
  0x80   :  { %303 = vsyncpa [#allocation3], 1 }
  0x81   :  { %304 = vsyncpa [#allocation6], 1 }
  0x82   :  { %305 = vsyncpa [#allocation9], 1 }
  0x83   :  { %306 = vsyncpa [#allocation4], 1 }

</bundles_post_ra>
